<compile_context>
chip_gen: v6e
topology: v6e:2x2x1
jax: 0.10.0
libtpu: 0.0.40
codegen_flags: <defaults>
</compile_context>

<pallas_src>
import functools

import jax
import jax.numpy as jnp
from jax.experimental import pallas as pl
from jax.experimental.pallas import tpu as pltpu


def _round_up(x, m):
    return ((x + m - 1) // m) * m


# ----------------------------- Pallas kernel -------------------------------- #
def gonn_layer_kernel(a_ref, e_ref, acc_in_ref, e_out_ref, acc_out_ref, acc_scratch):
    """One GONN layer: e_new = A[row-tile, :] @ E via a K-reduction, fused with
    the running layer sum acc_out = acc_in + e_new."""
    k = pl.program_id(1)

    @pl.when(k == 0)
    def _():
        acc_scratch[...] = jnp.zeros_like(acc_scratch)

    # bf16 x bf16 tiles on the MXU, f32 accumulation in VMEM scratch.
    acc_scratch[...] += jnp.dot(a_ref[...], e_ref[...],
                                preferred_element_type=jnp.float32)

    @pl.when(k == pl.num_programs(1) - 1)
    def _():
        e_new = acc_scratch[...]
        e_out_ref[...] = e_new.astype(e_out_ref.dtype)   # bf16 feed for next layer
        acc_out_ref[...] = acc_in_ref[...] + e_new       # f32 running layer sum


def _gonn_layer(a_bf16, e_bf16, acc_f32, *, block_n):
    n_pad, c_pad = e_bf16.shape
    grid = (n_pad // block_n, n_pad // block_n)

    # Advisory cost estimate: A streamed once (bf16), E re-fetched per row tile,
    # acc in/out + e_out written once.
    flops = 2 * n_pad * n_pad * c_pad
    bytes_accessed = (n_pad * n_pad * 2
                      + grid[0] * n_pad * c_pad * 2
                      + n_pad * c_pad * (4 + 4 + 2))

    return pl.pallas_call(
        gonn_layer_kernel,
        out_shape=(jax.ShapeDtypeStruct((n_pad, c_pad), jnp.bfloat16),
                   jax.ShapeDtypeStruct((n_pad, c_pad), jnp.float32)),
        grid_spec=pltpu.PrefetchScalarGridSpec(
            num_scalar_prefetch=0,
            grid=grid,
            in_specs=[
                pl.BlockSpec((block_n, block_n), lambda i, k: (i, k)),  # A tile
                pl.BlockSpec((block_n, c_pad), lambda i, k: (k, 0)),    # E k-slab
                pl.BlockSpec((block_n, c_pad), lambda i, k: (i, 0)),    # acc_in
            ],
            out_specs=[
                pl.BlockSpec((block_n, c_pad), lambda i, k: (i, 0)),    # e_out
                pl.BlockSpec((block_n, c_pad), lambda i, k: (i, 0)),    # acc_out
            ],
            scratch_shapes=[pltpu.VMEM((block_n, c_pad), jnp.float32)],
        ),
        compiler_params=pltpu.CompilerParams(
            # Row axis independent -> shards across the 2 TCs on v7x; K axis is
            # the reduction -> "arbitrary".
            dimension_semantics=("parallel", "arbitrary"),
            vmem_limit_bytes=32 * 1024 * 1024,
        ),
        cost_estimate=pl.CostEstimate(flops=int(flops), transcendentals=0,
                                      bytes_accessed=int(bytes_accessed)),
    )(a_bf16, e_bf16, acc_f32)


def gonn_propagate(a_norm, x, num_layers=2, block_n=128):
    """mean_{l=0..L} (A_norm)^l @ X, one tiled Pallas matmul per layer.

    block_n: 128 works on all generations (multiple of 8 sublanes / 128 lanes);
    on v6e, 256-multiples better feed the 2x256^2 MXU — tune per generation.
    """
    n, c = x.shape
    n_pad = _round_up(n, block_n)
    c_pad = _round_up(max(c, 1), 128)   # lane-dense output / full-width MXU RHS

    # Zero-pad: padded rows/cols of A and padded rows/channels of E are zero, so
    # the un-padded block of the result is exact; padding stripped at the end.
    a_pad = jnp.zeros((n_pad, n_pad), jnp.float32).at[:n, :n].set(a_norm)
    x_pad = jnp.zeros((n_pad, c_pad), jnp.float32).at[:n, :c].set(x)

    a_bf16 = a_pad.astype(jnp.bfloat16)   # bf16-native MXU on v5e/v6e/v7x
    e_bf16 = x_pad.astype(jnp.bfloat16)
    acc = x_pad                            # f32 running sum (layer-0 term, exact)

    # Layer loop stays in JAX: every layer needs the full previous-layer E.
    for _ in range(num_layers):
        e_bf16, acc = _gonn_layer(a_bf16, e_bf16, acc, block_n=block_n)

    out = acc / jnp.float32(num_layers + 1)
    return out[:n, :c]


# ------------------------------- JAX glue ----------------------------------- #
def build_norm_adj(edge_index, num_nodes):
    """Dense symmetric-normalized adjacency D^-1/2 (A + A^T) D^-1/2.

    Note: duplicate edges collapse to 1.0 (binary adjacency), matching the usual
    LightGCN-style formulation.
    """
    src, dst = edge_index[0], edge_index[1]
    adj = jnp.zeros((num_nodes, num_nodes), jnp.float32)
    adj = adj.at[src, dst].set(1.0)
    adj = adj.at[dst, src].set(1.0)
    deg = adj.sum(axis=1)
    d_inv_sqrt = jnp.where(deg > 0.0, 1.0 / jnp.sqrt(deg), 0.0)
    return adj * d_inv_sqrt[:, None] * d_inv_sqrt[None, :]


def ordrec_forward(x, user_idx, edge_index, num_users, num_layers=2):
    """Mirrors OrdRec.forward: returns (user_embedding, item_embedding)."""
    num_nodes = x.shape[0]
    a_norm = build_norm_adj(edge_index, num_nodes)
    all_embedding = gonn_propagate(a_norm, x, num_layers=num_layers)  # Pallas hot path
    user_embedding = all_embedding[user_idx]        # gather = glue
    item_embedding = all_embedding[num_users:]      # slice  = glue
    return user_embedding, item_embedding


def xavier_uniform(key, shape):
    """torch.nn.init.xavier_uniform_ for a 2-D tensor (fan_out, fan_in)."""
    fan_out, fan_in = shape
    bound = (6.0 / (fan_in + fan_out)) ** 0.5
    return jax.random.uniform(key, shape, jnp.float32, -bound, bound)


# --------------------------------- main -------------------------------------- #
if __name__ == "__main__":
    # Small but non-degenerate: N = 256 nodes -> a real (2, 2) tile grid with the
    # (128, 128) blocks, C = 32 padded to 128 inside the kernel.
    num_users, num_items, in_channel = 96, 160, 32
    num_layers = 2
    num_nodes = num_users + num_items

    key = jax.random.PRNGKey(0)
    k_x, k_u, k_i = jax.random.split(key, 3)

    # nn.Parameter x : (num_nodes, in_channel), xavier-uniform init (deterministic).
    x = xavier_uniform(k_x, (num_nodes, in_channel))

    # Synthetic bipartite user->item edge_index, shape (2, E).
    E = 512
    users = jax.random.randint(k_u, (E,), 0, num_users, dtype=jnp.int32)
    items = jax.random.randint(k_i, (E,), 0, num_items, dtype=jnp.int32) + num_users
    edge_index = jnp.stack([users, items], axis=0)

    # Batch of user indices (all < num_users, as asserted in forward()).
    user_idx = jnp.array([0, 3, 5, 7], dtype=jnp.int32)

    fwd = jax.jit(functools.partial(ordrec_forward, num_users=num_users,
                                    num_layers=num_layers))
    user_emb, item_emb = fwd(x, user_idx, edge_index)
    jax.block_until_ready((user_emb, item_emb))

    # Pure-JAX f32 reference. Kernel uses bf16 operands with f32 accumulation,
    # so tolerances are set accordingly (observed error ~1e-3 at these scales).
    a_norm = build_norm_adj(edge_index, num_nodes)
    e = x
    acc = x
    for _ in range(num_layers):
        e = jnp.dot(a_norm, e, precision=jax.lax.Precision.HIGHEST)
        acc = acc + e
    all_ref = acc / (num_layers + 1)
    assert jnp.allclose(user_emb, all_ref[user_idx], atol=1e-2, rtol=1e-2)
    assert jnp.allclose(item_emb, all_ref[num_users:], atol=1e-2, rtol=1e-2)
    assert user_emb.shape == (user_idx.shape[0], in_channel)
    assert item_emb.shape == (num_items, in_channel)

    print("KERNEL_OK")
</pallas_src>

<mosaic_0001>
module attributes {stable_mosaic.version = 11 : i64} {
  func.func @gonn_layer_kernel(%arg0: i32, %arg1: i32, %arg2: memref<128x128xbf16, #tpu.memory_space<vmem>>, %arg3: memref<128x128xbf16, #tpu.memory_space<vmem>>, %arg4: memref<128x128xf32, #tpu.memory_space<vmem>>, %arg5: memref<128x128xbf16, #tpu.memory_space<vmem>>, %arg6: memref<128x128xf32, #tpu.memory_space<vmem>>, %arg7: memref<128x128xf32, #tpu.memory_space<vmem>>) attributes {dimension_semantics = [#tpu.dimension_semantics<parallel>, #tpu.dimension_semantics<arbitrary>], iteration_bounds = array<i64: 2, 2>, scalar_prefetch = 0 : i64, scratch_operands = 1 : i64, tpu.core_type = #tpu.core_type<tc>, window_params = [{transform_indices = @transform_0, window_bounds = array<i64: 128, 128>}, {transform_indices = @transform_1, window_bounds = array<i64: 128, 128>}, {transform_indices = @transform_2, window_bounds = array<i64: 128, 128>}, {transform_indices = @transform_3, window_bounds = array<i64: 128, 128>}, {transform_indices = @transform_4, window_bounds = array<i64: 128, 128>}]} {
    %c0_i32 = arith.constant 0 : i32
    %0 = arith.cmpi eq, %arg1, %c0_i32 : i32
    %1 = arith.extui %0 : i1 to i32
    %c0_i32_0 = arith.constant 0 : i32
    %2 = arith.cmpi ne, %1, %c0_i32_0 : i32
    scf.if %2 {
      %cst_9 = arith.constant 0.000000e+00 : f32
      %12 = vector.broadcast %cst_9 : f32 to vector<128x128xf32>
      %c0_10 = arith.constant 0 : index
      %c0_11 = arith.constant 0 : index
      %13 = vector.load %arg7[%c0_10, %c0_11] : memref<128x128xf32, #tpu.memory_space<vmem>>, vector<128x128xf32>
      tpu.vector_store %arg7[%c0_10, %c0_11], %12 {strides = array<i32>} : memref<128x128xf32, #tpu.memory_space<vmem>>, vector<128x128xf32>,
    } else {
    }
    %c0 = arith.constant 0 : index
    %c0_1 = arith.constant 0 : index
    %3 = vector.load %arg7[%c0, %c0_1] : memref<128x128xf32, #tpu.memory_space<vmem>>, vector<128x128xf32>
    %c0_2 = arith.constant 0 : index
    %c0_3 = arith.constant 0 : index
    %4 = vector.load %arg2[%c0_2, %c0_3] : memref<128x128xbf16, #tpu.memory_space<vmem>>, vector<128x128xbf16>
    %c0_4 = arith.constant 0 : index
    %c0_5 = arith.constant 0 : index
    %5 = vector.load %arg3[%c0_4, %c0_5] : memref<128x128xbf16, #tpu.memory_space<vmem>>, vector<128x128xbf16>
    %cst = arith.constant dense<0.000000e+00> : vector<128x128xf32>
    %6 = tpu.matmul %4, %5, %cst {dimension_numbers = #tpu.dot_dimension_numbers<[1], [0], [0], [1], [0, 0, 1, 1], [], []>} : vector<128x128xbf16>, vector<128x128xbf16>, vector<128x128xf32> -> vector<128x128xf32>
    %7 = arith.addf %3, %6 : vector<128x128xf32>
    %c0_6 = arith.constant 0 : index
    %c0_7 = arith.constant 0 : index
    %8 = vector.load %arg7[%c0_6, %c0_7] : memref<128x128xf32, #tpu.memory_space<vmem>>, vector<128x128xf32>
    tpu.vector_store %arg7[%c0_6, %c0_7], %7 {strides = array<i32>} : memref<128x128xf32, #tpu.memory_space<vmem>>, vector<128x128xf32>,
    %c1_i32 = arith.constant 1 : i32
    %9 = arith.cmpi eq, %arg1, %c1_i32 : i32
    %10 = arith.extui %9 : i1 to i32
    %c0_i32_8 = arith.constant 0 : i32
    %11 = arith.cmpi ne, %10, %c0_i32_8 : i32
    scf.if %11 {
      %c0_9 = arith.constant 0 : index
      %c0_10 = arith.constant 0 : index
      %12 = vector.load %arg7[%c0_9, %c0_10] : memref<128x128xf32, #tpu.memory_space<vmem>>, vector<128x128xf32>
      %13 = arith.truncf %12 : vector<128x128xf32> to vector<128x128xbf16>
      %c0_11 = arith.constant 0 : index
      %c0_12 = arith.constant 0 : index
      %14 = vector.load %arg5[%c0_11, %c0_12] : memref<128x128xbf16, #tpu.memory_space<vmem>>, vector<128x128xbf16>
      tpu.vector_store %arg5[%c0_11, %c0_12], %13 {strides = array<i32>} : memref<128x128xbf16, #tpu.memory_space<vmem>>, vector<128x128xbf16>,
      %c0_13 = arith.constant 0 : index
      %c0_14 = arith.constant 0 : index
      %15 = vector.load %arg4[%c0_13, %c0_14] : memref<128x128xf32, #tpu.memory_space<vmem>>, vector<128x128xf32>
      %16 = arith.addf %15, %12 : vector<128x128xf32>
      %c0_15 = arith.constant 0 : index
      %c0_16 = arith.constant 0 : index
      %17 = vector.load %arg6[%c0_15, %c0_16] : memref<128x128xf32, #tpu.memory_space<vmem>>, vector<128x128xf32>
      tpu.vector_store %arg6[%c0_15, %c0_16], %16 {strides = array<i32>} : memref<128x128xf32, #tpu.memory_space<vmem>>, vector<128x128xf32>,
    } else {
    }
    return
  }
  func.func @transform_0(%arg0: i32, %arg1: i32) -> (i32, i32) {
    %c0_i32 = arith.constant 0 : i32
    return %arg0, %arg1 : i32, i32
  }
  func.func @transform_1(%arg0: i32, %arg1: i32) -> (i32, i32) {
    %c0_i32 = arith.constant 0 : i32
    %c0_i32_0 = arith.constant 0 : i32
    return %arg1, %c0_i32 : i32, i32
  }
  func.func @transform_2(%arg0: i32, %arg1: i32) -> (i32, i32) {
    %c0_i32 = arith.constant 0 : i32
    %c0_i32_0 = arith.constant 0 : i32
    return %arg0, %c0_i32 : i32, i32
  }
  func.func @transform_3(%arg0: i32, %arg1: i32) -> (i32, i32) {
    %c0_i32 = arith.constant 0 : i32
    %c0_i32_0 = arith.constant 0 : i32
    return %arg0, %c0_i32 : i32, i32
  }
  func.func @transform_4(%arg0: i32, %arg1: i32) -> (i32, i32) {
    %c0_i32 = arith.constant 0 : i32
    %c0_i32_0 = arith.constant 0 : i32
    return %arg0, %c0_i32 : i32, i32
  }
}

module attributes {stable_mosaic.version = 11 : i64} {
  func.func @gonn_layer_kernel(%arg0: i32, %arg1: i32, %arg2: memref<128x128xbf16, #tpu.memory_space<vmem>>, %arg3: memref<128x128xbf16, #tpu.memory_space<vmem>>, %arg4: memref<128x128xf32, #tpu.memory_space<vmem>>, %arg5: memref<128x128xbf16, #tpu.memory_space<vmem>>, %arg6: memref<128x128xf32, #tpu.memory_space<vmem>>, %arg7: memref<128x128xf32, #tpu.memory_space<vmem>>) attributes {dimension_semantics = [#tpu.dimension_semantics<parallel>, #tpu.dimension_semantics<arbitrary>], iteration_bounds = array<i64: 2, 2>, scalar_prefetch = 0 : i64, scratch_operands = 1 : i64, tpu.core_type = #tpu.core_type<tc>, window_params = [{transform_indices = @transform_0, window_bounds = array<i64: 128, 128>}, {transform_indices = @transform_1, window_bounds = array<i64: 128, 128>}, {transform_indices = @transform_2, window_bounds = array<i64: 128, 128>}, {transform_indices = @transform_3, window_bounds = array<i64: 128, 128>}, {transform_indices = @transform_4, window_bounds = array<i64: 128, 128>}]} {
    %c0_i32 = arith.constant 0 : i32
    %0 = arith.cmpi eq, %arg1, %c0_i32 : i32
    %1 = arith.extui %0 : i1 to i32
    %c0_i32_0 = arith.constant 0 : i32
    %2 = arith.cmpi ne, %1, %c0_i32_0 : i32
    scf.if %2 {
      %cst_9 = arith.constant 0.000000e+00 : f32
      %12 = vector.broadcast %cst_9 : f32 to vector<128x128xf32>
      %c0_10 = arith.constant 0 : index
      %c0_11 = arith.constant 0 : index
      %13 = vector.load %arg7[%c0_10, %c0_11] : memref<128x128xf32, #tpu.memory_space<vmem>>, vector<128x128xf32>
      tpu.vector_store %arg7[%c0_10, %c0_11], %12 {strides = array<i32>} : memref<128x128xf32, #tpu.memory_space<vmem>>, vector<128x128xf32>,
    } else {
    }
    %c0 = arith.constant 0 : index
    %c0_1 = arith.constant 0 : index
    %3 = vector.load %arg7[%c0, %c0_1] : memref<128x128xf32, #tpu.memory_space<vmem>>, vector<128x128xf32>
    %c0_2 = arith.constant 0 : index
    %c0_3 = arith.constant 0 : index
    %4 = vector.load %arg2[%c0_2, %c0_3] : memref<128x128xbf16, #tpu.memory_space<vmem>>, vector<128x128xbf16>
    %c0_4 = arith.constant 0 : index
    %c0_5 = arith.constant 0 : index
    %5 = vector.load %arg3[%c0_4, %c0_5] : memref<128x128xbf16, #tpu.memory_space<vmem>>, vector<128x128xbf16>
    %cst = arith.constant dense<0.000000e+00> : vector<128x128xf32>
    %6 = tpu.matmul %4, %5, %cst {dimension_numbers = #tpu.dot_dimension_numbers<[1], [0], [0], [1], [0, 0, 1, 1], [], []>} : vector<128x128xbf16>, vector<128x128xbf16>, vector<128x128xf32> -> vector<128x128xf32>
    %7 = arith.addf %3, %6 : vector<128x128xf32>
    %c0_6 = arith.constant 0 : index
    %c0_7 = arith.constant 0 : index
    %8 = vector.load %arg7[%c0_6, %c0_7] : memref<128x128xf32, #tpu.memory_space<vmem>>, vector<128x128xf32>
    tpu.vector_store %arg7[%c0_6, %c0_7], %7 {strides = array<i32>} : memref<128x128xf32, #tpu.memory_space<vmem>>, vector<128x128xf32>,
    %c1_i32 = arith.constant 1 : i32
    %9 = arith.cmpi eq, %arg1, %c1_i32 : i32
    %10 = arith.extui %9 : i1 to i32
    %c0_i32_8 = arith.constant 0 : i32
    %11 = arith.cmpi ne, %10, %c0_i32_8 : i32
    scf.if %11 {
      %c0_9 = arith.constant 0 : index
      %c0_10 = arith.constant 0 : index
      %12 = vector.load %arg7[%c0_9, %c0_10] : memref<128x128xf32, #tpu.memory_space<vmem>>, vector<128x128xf32>
      %13 = arith.truncf %12 : vector<128x128xf32> to vector<128x128xbf16>
      %c0_11 = arith.constant 0 : index
      %c0_12 = arith.constant 0 : index
      %14 = vector.load %arg5[%c0_11, %c0_12] : memref<128x128xbf16, #tpu.memory_space<vmem>>, vector<128x128xbf16>
      tpu.vector_store %arg5[%c0_11, %c0_12], %13 {strides = array<i32>} : memref<128x128xbf16, #tpu.memory_space<vmem>>, vector<128x128xbf16>,
      %c0_13 = arith.constant 0 : index
      %c0_14 = arith.constant 0 : index
      %15 = vector.load %arg4[%c0_13, %c0_14] : memref<128x128xf32, #tpu.memory_space<vmem>>, vector<128x128xf32>
      %16 = arith.addf %15, %12 : vector<128x128xf32>
      %c0_15 = arith.constant 0 : index
      %c0_16 = arith.constant 0 : index
      %17 = vector.load %arg6[%c0_15, %c0_16] : memref<128x128xf32, #tpu.memory_space<vmem>>, vector<128x128xf32>
      tpu.vector_store %arg6[%c0_15, %c0_16], %16 {strides = array<i32>} : memref<128x128xf32, #tpu.memory_space<vmem>>, vector<128x128xf32>,
    } else {
    }
    return
  }
  func.func @transform_0(%arg0: i32, %arg1: i32) -> (i32, i32) {
    %c0_i32 = arith.constant 0 : i32
    return %arg0, %arg1 : i32, i32
  }
  func.func @transform_1(%arg0: i32, %arg1: i32) -> (i32, i32) {
    %c0_i32 = arith.constant 0 : i32
    %c0_i32_0 = arith.constant 0 : i32
    return %arg1, %c0_i32 : i32, i32
  }
  func.func @transform_2(%arg0: i32, %arg1: i32) -> (i32, i32) {
    %c0_i32 = arith.constant 0 : i32
    %c0_i32_0 = arith.constant 0 : i32
    return %arg0, %c0_i32 : i32, i32
  }
  func.func @transform_3(%arg0: i32, %arg1: i32) -> (i32, i32) {
    %c0_i32 = arith.constant 0 : i32
    %c0_i32_0 = arith.constant 0 : i32
    return %arg0, %c0_i32 : i32, i32
  }
  func.func @transform_4(%arg0: i32, %arg1: i32) -> (i32, i32) {
    %c0_i32 = arith.constant 0 : i32
    %c0_i32_0 = arith.constant 0 : i32
    return %arg0, %c0_i32 : i32, i32
  }
}

</mosaic_0001>

<bundles_post_ra>
// kernel: ordrec_forward.2
= control target key start
LH: loop header
LB: loop body
LE: loop exit
PB: predicated region body
PF: predicated region fallthrough
CT: control target
= control target key end

     0   :  { %s1291_s15 = smov 0   ;;  %s1293_s16 = smov 0   ;;  %s1475_s0 = inlined_call_operand.vmem [shape: bf16[256,256], index: 0, kind: input, shape index: {}]   ;;  %s1476_s1 = inlined_call_operand.vmem [shape: bf16[256,128], index: 1, kind: input, shape index: {}]   ;;  %s1477_s2 = inlined_call_operand.vmem [shape: f32[256,128], index: 2, kind: input, shape index: {}]   ;;  %s1478_s3 = inlined_call_operand.vmem [shape: bf16[256,128], index: 3, kind: output, shape index: {0}]   ;;  %s1479_s4 = inlined_call_operand.vmem [shape: f32[256,128], index: 4, kind: output, shape index: {1}]  }
   0x1   :  { %s1295_s17 = smov 0   ;;  %s1297_s18 = smov 0  }
   0x2   :  { %s1299_s19 = smov 0   ;;  %s1301_s20 = smov 0  }
   0x3   :  { %s1303_s21 = smov 0  }
   0x4 LB: > { %s24_s22 = sadd.s32 1, %s1255_s19  ;;  %s27_s23 = sadd.s32 1, %s1259_s20  ;;  %s1263_s21 = sphi %s1303_s21, %s15_s21   ;;  %s1259_s20 = sphi %s1301_s20, %s1485_s20   ;;  %s1255_s19 = sphi %s1299_s19, %s1484_s19   ;;  %s1251_s18 = sphi %s1297_s18, %s1483_s18   ;;  %s1247_s17 = sphi %s1295_s17, %s1482_s17   ;;  %s1243_s16 = sphi %s1293_s16, %s1481_s16   ;;  %s1239_s15 = sphi %s1291_s15, %s1480_s15  }
   0x5   : > { %p25_p0 = scmp.ge.s32.totalorder %s24_s22, 2  ;;  %p43_p1 = scmp.ne.s32.totalorder %s1243_s16, %s1239_s15 }
   0x6   : > { %p44_p2 = scmp.eq.s32.totalorder %s1263_s21, 0  ;;  %s36_s27 = sadd.s32 1, %s1243_s16 }
   0x7   : > { %s1487_s22 = smov (%p25_p0, %s24_s22), 0  ;;  %s1489_s23 = smov (!%p25_p0, %s27_s23), %s1259_s20 }
   0x8   : > { %p45_p3 = por %p44_p2, %p43_p1  ;;  %p29_p4 = scmp.ge.s32.totalorder %s1489_s23, 2 }
   0x9   : > { %s32_s24 = ssub.s32 %s1255_s19, %s1487_s22  ;;  %p957_p6 = scmp.ge.s32.totalorder %s1263_s21, 4 }
   0xa   : > { %s1491_s23 = smov (%p29_p4, %s1489_s23), 0 }
   0xb   : > { %s31_s25 = ssub.s32 %s1259_s20, %s1491_s23  ;;  %173 = sbr.rel (%p957_p6) target bundleno = 32 (0x20), region = 16 }
   0xc   : > { %s33_s26 = sor.u32 %s32_s24, %s31_s25 }
   0xd   : > { %p34_p5 = scmp.eq.s32.totalorder %s33_s26, 0 }
   0xf   : > { %s1342_s28 = scalar_select %p34_p5, %s1243_s16, %s36_s27  }
  0x10   : > { %176 = sbr.rel (!%p45_p3) target bundleno = 32 (0x20), region = 20  ;;  %s178_s29 = sand.u32 (%p45_p3), 1, %s1243_s16  }
  0x11   : > { %s1008_s30 = sshll.u32 (%p45_p3), %s1259_s20, 5  ;;  %s958_s5 = sshll.u32 (%p45_p3), %s178_s29, 6 }
  0x12   : > { %s183_s6 = sadd.s32 (%p45_p3), %s1255_s19, %s1008_s30  ;;  %s180_s11 = scalar_lea.vmem (%p45_p3), [#allocation3], %s958_s5 }
  0x13   : > { %s961_s7 = sshll.u32 (%p45_p3), %s183_s6, 2 }
  0x14   : > { %s1351_s10 = scalar_lea.vmem (%p45_p3), %s1475_s0, %s961_s7 }
  0x15   : > { %v202_v0 = vld [vmem:[%s1351_s10] sm:$0xf]  ;;  %v204_v1 = vld [vmem:[%s1351_s10 + $0x8] sm:$0xf]  ;;  %v206_v2 = vld [vmem:[%s1351_s10 + $0x10] sm:$0xf] }
  0x16   : > { %203 = vst [vmem:[%s180_s11] sm:$0xf] %v202_v0  ;;  %205 = vst [vmem:[%s180_s11 + $0x4] sm:$0xf] %v204_v1  ;;  %v208_v3 = vld [vmem:[%s1351_s10 + $0x18] sm:$0xf] }
  0x17   : > { %207 = vst [vmem:[%s180_s11 + $0x8] sm:$0xf] %v206_v2  ;;  %v210_v4 = vld [vmem:[%s1351_s10 + $0x20] sm:$0xf]  ;;  %v212_v5 = vld [vmem:[%s1351_s10 + $0x28] sm:$0xf] }
  0x18   : > { %209 = vst [vmem:[%s180_s11 + $0xc] sm:$0xf] %v208_v3  ;;  %211 = vst [vmem:[%s180_s11 + $0x10] sm:$0xf] %v210_v4  ;;  %v214_v6 = vld [vmem:[%s1351_s10 + $0x30] sm:$0xf] }
  0x19   : > { %213 = vst [vmem:[%s180_s11 + $0x14] sm:$0xf] %v212_v5  ;;  %v216_v7 = vld [vmem:[%s1351_s10 + $0x38] sm:$0xf]  ;;  %v218_v8 = vld [vmem:[%s1351_s10 + $0x40] sm:$0xf] }
  0x1a   : > { %215 = vst [vmem:[%s180_s11 + $0x18] sm:$0xf] %v214_v6  ;;  %217 = vst [vmem:[%s180_s11 + $0x1c] sm:$0xf] %v216_v7  ;;  %v220_v9 = vld [vmem:[%s1351_s10 + $0x48] sm:$0xf] }
  0x1b   : > { %219 = vst [vmem:[%s180_s11 + $0x20] sm:$0xf] %v218_v8  ;;  %v222_v10 = vld [vmem:[%s1351_s10 + $0x50] sm:$0xf]  ;;  %v224_v11 = vld [vmem:[%s1351_s10 + $0x58] sm:$0xf] }
  0x1c   : > { %221 = vst [vmem:[%s180_s11 + $0x24] sm:$0xf] %v220_v9  ;;  %223 = vst [vmem:[%s180_s11 + $0x28] sm:$0xf] %v222_v10  ;;  %v226_v12 = vld [vmem:[%s1351_s10 + $0x60] sm:$0xf] }
  0x1d   : > { %225 = vst [vmem:[%s180_s11 + $0x2c] sm:$0xf] %v224_v11  ;;  %v228_v13 = vld [vmem:[%s1351_s10 + $0x68] sm:$0xf]  ;;  %v230_v14 = vld [vmem:[%s1351_s10 + $0x70] sm:$0xf] }
  0x1e   : > { %227 = vst [vmem:[%s180_s11 + $0x30] sm:$0xf] %v226_v12  ;;  %229 = vst [vmem:[%s180_s11 + $0x34] sm:$0xf] %v228_v13  ;;  %v232_v15 = vld [vmem:[%s1351_s10 + $0x78] sm:$0xf] }
  0x1f   : > { %231 = vst [vmem:[%s180_s11 + $0x38] sm:$0xf] %v230_v14  ;;  %233 = vst [vmem:[%s180_s11 + $0x3c] sm:$0xf] %v232_v15 }
  0x20 PF: > { %p962_p7 = scmp.ge.s32.totalorder %s1263_s21, 1  ;;  %p306_p8 = scmp.lt.s32.totalorder %s1263_s21, 5 }
  0x22   : > { %p307_p9 = pnand %p962_p7, %p306_p8 }
  0x23   : > { %s313_s12 = sand.u32 (!%p307_p9), 1, %s1239_s15   ;;  %s964_s13 = sshll.u32 (!%p307_p9), %s1247_s17, 4 }
  0x24   : > { %310 = sbr.rel (%p307_p9) target bundleno = 321 (0x141), region = 69  ;;  %s963_s14 = sshll.u32 (!%p307_p9), %s313_s12, 6 }
  0x25   : > { %p355_p10 = scmp.lt.s32.totalorder (!%p307_p9), %s964_s13, 31  ;;  %s966_s24 = sshll.u32 (!%p307_p9), %s1251_s18, 4 }
  0x26   : > { %p361_p11 = scmp.lt.s32.totalorder (!%p307_p9), %s966_s24, 31  ;;  %p972_p12 = scmp.ne.s32.totalorder (!%p307_p9), %s1247_s17, 0 }
  0x29   : > { %s1493_s13 = smov (!%p355_p10, %s964_s13), 31  ;;  %s1495_s24 = smov (!%p361_p11, %s966_s24), 31 }
  0x2a   : > { %s965_s25 = sshll.u32 %s1493_s13, 2  ;;  %s967_s30 = sshll.u32 %s1495_s24, 3 }
  0x2b   : > { %s1377_s29 = scalar_lea.vmem %s1476_s1, %s965_s25  ;;  %s969_s5 = sshll.u32 %s1495_s24, 2 }
  0x2c   : > { %s1382_s8 = scalar_lea.vmem %s1477_s2, %s967_s30  ;;  %s1387_s18 = scalar_lea.vmem %s1478_s3, %s969_s5 }
  0x2d   : > { %s1392_s12 = scalar_lea.vmem %s1479_s4, %s967_s30  ;;  %s1394_s13 = scalar_lea.vmem [#allocation3], %s963_s14 }
  0x2e   : > { %382 = sbr.rel (%p972_p12) target bundleno = 60 (0x3c), region = 77 }
  0x33   : > { %v1265_v16 = vmov 0.0  }
  0x34   : > { %383 = vst [vmem:[#allocation2 + $0x30] sm:$0xff] %v1265_v16  ;;  %384 = vst [vmem:[#allocation2] sm:$0xff] %v1265_v16 }
  0x35   : > { %385 = vst [vmem:[#allocation2 + $0x58] sm:$0xff] %v1265_v16  ;;  %386 = vst [vmem:[#allocation2 + $0x18] sm:$0xff] %v1265_v16 }
  0x36   : > { %387 = vst [vmem:[#allocation2 + $0x50] sm:$0xff] %v1265_v16  ;;  %388 = vst [vmem:[#allocation2 + $0x68] sm:$0xff] %v1265_v16 }
  0x37   : > { %389 = vst [vmem:[#allocation2 + $0x8] sm:$0xff] %v1265_v16  ;;  %390 = vst [vmem:[#allocation2 + $0x48] sm:$0xff] %v1265_v16 }
  0x38   : > { %391 = vst [vmem:[#allocation2 + $0x40] sm:$0xff] %v1265_v16  ;;  %392 = vst [vmem:[#allocation2 + $0x20] sm:$0xff] %v1265_v16 }
  0x39   : > { %393 = vst [vmem:[#allocation2 + $0x10] sm:$0xff] %v1265_v16  ;;  %394 = vst [vmem:[#allocation2 + $0x38] sm:$0xff] %v1265_v16 }
  0x3a   : > { %395 = vst [vmem:[#allocation2 + $0x60] sm:$0xff] %v1265_v16  ;;  %396 = vst [vmem:[#allocation2 + $0x70] sm:$0xff] %v1265_v16 }
  0x3b   : > { %397 = vst [vmem:[#allocation2 + $0x78] sm:$0xff] %v1265_v16  ;;  %398 = vst [vmem:[#allocation2 + $0x28] sm:$0xff] %v1265_v16 }
  0x3c PF: > { %v1193_v17 = vld [vmem:[%s1377_s29 + $0x38] sm:$0xff]   ;;  %v1194_v18 = vld [vmem:[%s1377_s29 + $0x30] sm:$0xff]   ;;  %v1195_v19 = vld [vmem:[%s1377_s29 + $0x28] sm:$0xff]   ;;  %p989_p13 = scmp.ne.s32.totalorder %s1247_s17, 1 }
  0x3d   : > { %1088 = vmatprep.subr.bf16.mxu0 %v1193_v17  ;;  %1120 = vmatprep.subr.bf16.mxu1 %v1193_v17  ;;  %v1196_v20 = vld [vmem:[%s1377_s29 + $0x20] sm:$0xff]   ;;  %v1197_v23 = vld [vmem:[%s1377_s29 + $0x18] sm:$0xff]   ;;  %v1198_v24 = vld [vmem:[%s1377_s29 + $0x10] sm:$0xff]  }
  0x3e   : > { %1089 = vmatpush3.bf16.msra.mxu0 %v1193_v17  ;;  %1128 = vmatpush3.bf16.msra.mxu1 %v1193_v17  ;;  %v1201_v21 = vld [vmem:[%s1394_s13] sm:$0xff]   ;;  %v1199_v25 = vld [vmem:[%s1377_s29 + $0x8] sm:$0xff]   ;;  %v1205_v29 = vld [vmem:[%s1394_s13 + $0x10] sm:$0xff]  }
  0x3f   : > { %1090 = vmatprep.subr.bf16.mxu0 %v1194_v18  ;;  %1121 = vmatprep.subr.bf16.mxu1 %v1194_v18  ;;  %v1202_v22 = vld [vmem:[%s1394_s13 + $0x20] sm:$0xff]   ;;  %v1203_v27 = vld [vmem:[%s1394_s13 + $0x8] sm:$0xff]   ;;  %v1206_v30 = vld [vmem:[%s1394_s13 + $0x30] sm:$0xff]  }
  0x40   : > { %1104 = vmatprep.mubr.bf16.mxu0 %v1201_v21  ;;  %1112 = vmatprep.mubr.bf16.mxu1 %v1202_v22  ;;  %v1200_v26 = vld [vmem:[%s1377_s29] sm:$0xff]   ;;  %v1204_v28 = vld [vmem:[%s1394_s13 + $0x28] sm:$0xff]   ;;  %v1207_v31 = vld [vmem:[%s1394_s13 + $0x18] sm:$0xff]  }
  0x41   : > { %v1208_v32 = vld [vmem:[%s1394_s13 + $0x38] sm:$0xff]   ;;  %v409_v34 = vld [vmem:[#allocation2 + $0x10] sm:$0xff]  ;;  %v407_v38 = vld [vmem:[#allocation2 + $0x40] sm:$0xff] }
  0x42   : > { %1091 = vmatpush3.bf16.msra.mxu0 %v1194_v18  ;;  %1129 = vmatpush3.bf16.msra.mxu1 %v1194_v18  ;;  %v401_v33 = vld [vmem:[#allocation2 + $0x58] sm:$0xff]  ;;  %v399_v37 = vld [vmem:[#allocation2 + $0x30] sm:$0xff]  ;;  %v400_v49 = vld [vmem:[#allocation2] sm:$0xff] }
  0x43   : > { %1092 = vmatprep.subr.bf16.mxu0 %v1195_v19  ;;  %1122 = vmatprep.subr.bf16.mxu1 %v1195_v19  ;;  %v402_v43 = vld [vmem:[#allocation2 + $0x18] sm:$0xff]  ;;  %v408_v50 = vld [vmem:[#allocation2 + $0x20] sm:$0xff]  ;;  %v405_v55 = vld [vmem:[#allocation2 + $0x8] sm:$0xff] }
  0x44   : > { %v410_v44 = vld [vmem:[#allocation2 + $0x38] sm:$0xff]  ;;  %v403_v61 = vld [vmem:[#allocation2 + $0x50] sm:$0xff]  ;;  %v411_v62 = vld [vmem:[#allocation2 + $0x60] sm:$0xff] }
  0x45   : > { %v413_v56 = vld [vmem:[#allocation2 + $0x78] sm:$0xff]  ;;  %v406_v3 = vld [vmem:[#allocation2 + $0x48] sm:$0xff]  ;;  %v412_v10 = vld [vmem:[#allocation2 + $0x70] sm:$0xff] }
  0x46   : > { %1093 = vmatpush3.bf16.msra.mxu0 %v1195_v19  ;;  %1130 = vmatpush3.bf16.msra.mxu1 %v1195_v19  ;;  %v414_v4 = vld [vmem:[#allocation2 + $0x28] sm:$0xff] }
  0x47   : > { %1094 = vmatprep.subr.bf16.mxu0 %v1196_v20  ;;  %1123 = vmatprep.subr.bf16.mxu1 %v1196_v20  ;;  %v404_v9 = vld [vmem:[#allocation2 + $0x68] sm:$0xff] }
  0x4a   : > { %1095 = vmatpush3.bf16.msra.mxu0 %v1196_v20  ;;  %1131 = vmatpush3.bf16.msra.mxu1 %v1196_v20 }
  0x4b   : > { %1096 = vmatprep.subr.bf16.mxu0 %v1197_v23  ;;  %1124 = vmatprep.subr.bf16.mxu1 %v1197_v23 }
  0x4e   : > { %1097 = vmatpush3.bf16.msra.mxu0 %v1197_v23  ;;  %1132 = vmatpush3.bf16.msra.mxu1 %v1197_v23 }
  0x4f   : > { %1098 = vmatprep.subr.bf16.mxu0 %v1198_v24  ;;  %1125 = vmatprep.subr.bf16.mxu1 %v1198_v24 }
  0x52   : > { %1099 = vmatpush3.bf16.msra.mxu0 %v1198_v24  ;;  %1133 = vmatpush3.bf16.msra.mxu1 %v1198_v24 }
  0x53   : > { %1100 = vmatprep.subr.bf16.mxu0 %v1199_v25  ;;  %1126 = vmatprep.subr.bf16.mxu1 %v1199_v25 }
  0x56   : > { %1101 = vmatpush3.bf16.msra.mxu0 %v1199_v25  ;;  %1134 = vmatpush3.bf16.msra.mxu1 %v1199_v25 }
  0x57   : > { %1102 = vmatprep.subr.bf16.mxu0 %v1200_v26  ;;  %1127 = vmatprep.subr.bf16.mxu1 %v1200_v26 }
  0x5a   : > { %1103 = vmatpush3.bf16.msra.mxu0 %v1200_v26  ;;  %1135 = vmatpush3.bf16.msra.mxu1 %v1200_v26 }
  0x5d   : > { %1105 = vmatmul.mubr.bf16.vlgmr.msra.gmra.mxu0 %v1203_v27  ;;  %1113 = vmatmul.mubr.bf16.vlgmr.msra.gmra.mxu1 %v1204_v28 }
  0x5e   : > { %1108 = vmatprep.mubr.bf16.mxu0 %v1205_v29  ;;  %1116 = vmatprep.mubr.bf16.mxu1 %v1206_v30 }
  0x65   : > { %1109 = vmatmul.mubr.bf16.gmra.mxu0 %v1207_v31  ;;  %1117 = vmatmul.mubr.bf16.gmra.mxu1 %v1208_v32 }
 0x11d   : > { %v1106_v35 = vpop.f32.mrf.mxu0  ;;  %v1114_v36 = vpop.f32.mrf.mxu1 }
 0x11e   : > { %v642_v39 = vadd.f32 %v1106_v35, %v401_v33  ;;  %v650_v40 = vadd.f32 %v1114_v36, %v409_v34 }
 0x11f   : > { %v577_v41 = vpop.f32.mrf.mxu0  ;;  %v609_v42 = vpop.f32.mrf.mxu1 }
 0x120   : > { %658 = vst [vmem:[#allocation2 + $0x58] sm:$0xff] %v642_v39  ;;  %666 = vst [vmem:[#allocation2 + $0x10] sm:$0xff] %v650_v40  ;;  %v640_v45 = vadd.f32 %v577_v41, %v399_v37  ;;  %v648_v46 = vadd.f32 %v609_v42, %v407_v38 }
 0x121   : > { %v1107_v47 = vpop.f32.mrf.mxu0  ;;  %v1115_v48 = vpop.f32.mrf.mxu1 }
 0x122   : > { %656 = vst [vmem:[#allocation2 + $0x30] sm:$0xff] %v640_v45  ;;  %664 = vst [vmem:[#allocation2 + $0x40] sm:$0xff] %v648_v46  ;;  %v643_v51 = vadd.f32 %v1107_v47, %v402_v43  ;;  %v651_v52 = vadd.f32 %v1115_v48, %v410_v44 }
 0x123   : > { %v580_v53 = vpop.f32.mrf.mxu0  ;;  %v612_v54 = vpop.f32.mrf.mxu1 }
 0x124   : > { %659 = vst [vmem:[#allocation2 + $0x18] sm:$0xff] %v643_v51  ;;  %667 = vst [vmem:[#allocation2 + $0x38] sm:$0xff] %v651_v52  ;;  %v641_v57 = vadd.f32 %v580_v53, %v400_v49  ;;  %v649_v58 = vadd.f32 %v612_v54, %v408_v50 }
 0x125   : > { %v1110_v59 = vpop.f32.mrf.mxu0  ;;  %v1118_v60 = vpop.f32.mrf.mxu1 }
 0x126   : > { %657 = vst [vmem:[#allocation2] sm:$0xff] %v641_v57  ;;  %665 = vst [vmem:[#allocation2 + $0x20] sm:$0xff] %v649_v58  ;;  %v646_v63 = vadd.f32 %v1110_v59, %v405_v55  ;;  %v654_v0 = vadd.f32 %v1118_v60, %v413_v56 }
 0x127   : > { %v593_v1 = vpop.f32.mrf.mxu0  ;;  %v625_v2 = vpop.f32.mrf.mxu1 }
 0x128   : > { %662 = vst [vmem:[#allocation2 + $0x8] sm:$0xff] %v646_v63  ;;  %670 = vst [vmem:[#allocation2 + $0x78] sm:$0xff] %v654_v0  ;;  %v644_v5 = vadd.f32 %v593_v1, %v403_v61  ;;  %v652_v6 = vadd.f32 %v625_v2, %v411_v62 }
 0x129   : > { %v1111_v7 = vpop.f32.mrf.mxu0  ;;  %v1119_v8 = vpop.f32.mrf.mxu1 }
 0x12a   : > { %660 = vst [vmem:[#allocation2 + $0x50] sm:$0xff] %v644_v5  ;;  %668 = vst [vmem:[#allocation2 + $0x60] sm:$0xff] %v652_v6  ;;  %v647_v11 = vadd.f32 %v1111_v7, %v406_v3  ;;  %v655_v12 = vadd.f32 %v1119_v8, %v414_v4  ;;  %675 = sbr.rel (%p989_p13) target bundleno = 321 (0x141), region = 81 }
 0x12b   : > { %v596_v13 = vpop.f32.mrf.mxu0  ;;  %v628_v14 = vpop.f32.mrf.mxu1 }
 0x12c   : > { %663 = vst [vmem:[#allocation2 + $0x48] sm:$0xff] %v647_v11  ;;  %671 = vst [vmem:[#allocation2 + $0x28] sm:$0xff] %v655_v12  ;;  %v645_v15 = vadd.f32 %v596_v13, %v404_v9  ;;  %v653_v16 = vadd.f32 %v628_v14, %v412_v10 }
 0x12e   : > { %661 = vst [vmem:[#allocation2 + $0x68] sm:$0xff] %v645_v15  ;;  %669 = vst [vmem:[#allocation2 + $0x70] sm:$0xff] %v653_v16 }
 0x12f   : > { %v676_v17 = vld [vmem:[#allocation2 + $0x30] sm:$0xff]  ;;  %v677_v18 = vld [vmem:[#allocation2] sm:$0xff]  ;;  %v678_v19 = vld [vmem:[#allocation2 + $0x58] sm:$0xff] }
 0x130   : > { %v1028_v20 = vpack.c.bf16 %v677_v18, %v676_v17  ;;  %v679_v21 = vld [vmem:[#allocation2 + $0x18] sm:$0xff]  ;;  %v682_v26 = vld [vmem:[#allocation2 + $0x8] sm:$0xff]  ;;  %v684_v28 = vld [vmem:[#allocation2 + $0x40] sm:$0xff] }
 0x131   : > { %v680_v22 = vld [vmem:[#allocation2 + $0x50] sm:$0xff]  ;;  %v1033_v24 = vpack.c.bf16 %v679_v21, %v678_v19  ;;  %v685_v30 = vld [vmem:[#allocation2 + $0x20] sm:$0xff]  ;;  %v687_v32 = vld [vmem:[#allocation2 + $0x38] sm:$0xff] }
 0x132   : > { %1029 = vst [vmem:[%s1387_s18] sm:$0xff] %v1028_v20   ;;  %v686_v31 = vld [vmem:[#allocation2 + $0x10] sm:$0xff]  ;;  %v1048_v33 = vpack.c.bf16 %v685_v30, %v684_v28  ;;  %v688_v35 = vld [vmem:[#allocation2 + $0x60] sm:$0xff]  ;;  %v690_v37 = vld [vmem:[#allocation2 + $0x78] sm:$0xff] }
 0x133   : > { %v683_v27 = vld [vmem:[#allocation2 + $0x48] sm:$0xff]  ;;  %1065 = vst [vmem:[%s1387_s18 + $0x8] sm:$0xff] %v1033_v24   ;;  %v1053_v34 = vpack.c.bf16 %v687_v32, %v686_v31  ;;  %v772_v40 = vld [vmem:[%s1382_s8] sm:$0xff]  ;;  %v774_v45 = vld [vmem:[%s1382_s8 + $0x10] sm:$0xff] }
 0x134   : > { %v1043_v29 = vpack.c.bf16 %v683_v27, %v682_v26  ;;  %v691_v39 = vld [vmem:[#allocation2 + $0x28] sm:$0xff]  ;;  %1068 = vst [vmem:[%s1387_s18 + $0x20] sm:$0xff] %v1048_v33   ;;  %v788_v43 = vadd.f32 %v772_v40, %v676_v17  ;;  %v775_v46 = vld [vmem:[%s1382_s8 + $0x18] sm:$0xff]  ;;  %v776_v47 = vld [vmem:[%s1382_s8 + $0x20] sm:$0xff]  ;;  %v790_v48 = vadd.f32 %v774_v45, %v678_v19 }
 0x135   : > { %v681_v23 = vld [vmem:[#allocation2 + $0x68] sm:$0xff]  ;;  %v689_v36 = vld [vmem:[#allocation2 + $0x70] sm:$0xff]  ;;  %1069 = vst [vmem:[%s1387_s18 + $0x28] sm:$0xff] %v1053_v34   ;;  %v1063_v42 = vpack.c.bf16 %v691_v39, %v690_v37  ;;  %v791_v49 = vadd.f32 %v775_v46, %v679_v21  ;;  %v792_v50 = vadd.f32 %v776_v47, %v680_v22  ;;  %v779_v53 = vld [vmem:[%s1382_s8 + $0x38] sm:$0xff] }
 0x136   : > { %v1038_v25 = vpack.c.bf16 %v681_v23, %v680_v22  ;;  %1067 = vst [vmem:[%s1387_s18 + $0x18] sm:$0xff] %v1043_v29   ;;  %v1058_v38 = vpack.c.bf16 %v689_v36, %v688_v35  ;;  %v773_v41 = vld [vmem:[%s1382_s8 + $0x8] sm:$0xff]  ;;  %v778_v52 = vld [vmem:[%s1382_s8 + $0x30] sm:$0xff]  ;;  %804 = vst [vmem:[%s1392_s12] sm:$0xff] %v788_v43  ;;  %v795_v56 = vadd.f32 %v779_v53, %v683_v27 }
 0x137   : > { %v789_v44 = vadd.f32 %v773_v41, %v677_v18  ;;  %v777_v51 = vld [vmem:[%s1382_s8 + $0x28] sm:$0xff]  ;;  %1071 = vst [vmem:[%s1387_s18 + $0x38] sm:$0xff] %v1063_v42   ;;  %v794_v55 = vadd.f32 %v778_v52, %v682_v26  ;;  %v780_v57 = vld [vmem:[%s1382_s8 + $0x40] sm:$0xff]  ;;  %v782_v59 = vld [vmem:[%s1382_s8 + $0x50] sm:$0xff] }
 0x138   : > { %1066 = vst [vmem:[%s1387_s18 + $0x10] sm:$0xff] %v1038_v25   ;;  %1070 = vst [vmem:[%s1387_s18 + $0x30] sm:$0xff] %v1058_v38   ;;  %v793_v54 = vadd.f32 %v777_v51, %v681_v23  ;;  %v781_v58 = vld [vmem:[%s1382_s8 + $0x48] sm:$0xff]  ;;  %v796_v60 = vadd.f32 %v780_v57, %v684_v28  ;;  %v798_v62 = vadd.f32 %v782_v59, %v686_v31  ;;  %v783_v63 = vld [vmem:[%s1382_s8 + $0x58] sm:$0xff] }
 0x139   : > { %805 = vst [vmem:[%s1392_s12 + $0x8] sm:$0xff] %v789_v44  ;;  %806 = vst [vmem:[%s1392_s12 + $0x10] sm:$0xff] %v790_v48  ;;  %v797_v61 = vadd.f32 %v781_v58, %v685_v30  ;;  %v784_v0 = vld [vmem:[%s1382_s8 + $0x60] sm:$0xff]  ;;  %v785_v1 = vld [vmem:[%s1382_s8 + $0x68] sm:$0xff]  ;;  %v799_v2 = vadd.f32 %v783_v63, %v687_v32 }
 0x13a   : > { %807 = vst [vmem:[%s1392_s12 + $0x18] sm:$0xff] %v791_v49  ;;  %808 = vst [vmem:[%s1392_s12 + $0x20] sm:$0xff] %v792_v50  ;;  %v800_v3 = vadd.f32 %v784_v0, %v688_v35  ;;  %v801_v4 = vadd.f32 %v785_v1, %v689_v36  ;;  %v786_v5 = vld [vmem:[%s1382_s8 + $0x70] sm:$0xff]  ;;  %v787_v6 = vld [vmem:[%s1382_s8 + $0x78] sm:$0xff] }
 0x13b   : > { %809 = vst [vmem:[%s1392_s12 + $0x28] sm:$0xff] %v793_v54  ;;  %810 = vst [vmem:[%s1392_s12 + $0x30] sm:$0xff] %v794_v55  ;;  %v802_v7 = vadd.f32 %v786_v5, %v690_v37  ;;  %v803_v8 = vadd.f32 %v787_v6, %v691_v39 }
 0x13c   : > { %811 = vst [vmem:[%s1392_s12 + $0x38] sm:$0xff] %v795_v56  ;;  %812 = vst [vmem:[%s1392_s12 + $0x40] sm:$0xff] %v796_v60 }
 0x13d   : > { %813 = vst [vmem:[%s1392_s12 + $0x48] sm:$0xff] %v797_v61  ;;  %814 = vst [vmem:[%s1392_s12 + $0x50] sm:$0xff] %v798_v62 }
 0x13e   : > { %815 = vst [vmem:[%s1392_s12 + $0x58] sm:$0xff] %v799_v2  ;;  %816 = vst [vmem:[%s1392_s12 + $0x60] sm:$0xff] %v800_v3 }
 0x13f   : > { %817 = vst [vmem:[%s1392_s12 + $0x68] sm:$0xff] %v801_v4  ;;  %818 = vst [vmem:[%s1392_s12 + $0x70] sm:$0xff] %v802_v7 }
 0x140   : > { %819 = vst [vmem:[%s1392_s12 + $0x78] sm:$0xff] %v803_v8 }
 0x141 PF: > { %s15_s21 = sadd.s32 1, %s1263_s21   ;;  %s1480_s15 = smov %s1243_s16 }
 0x142   : > { %p12_p0 = scmp.ge.s32.totalorder %s15_s21, 6   ;;  %s1481_s16 = smov %s1342_s28 }
 0x143   : > { %s1482_s17 = smov %s1255_s19  ;;  %s1483_s18 = smov %s1259_s20 }
 0x144   : > { %s1484_s19 = smov %s1487_s22  ;;  %s1485_s20 = smov %s1491_s23 }
 0x145   :  { %14 = sbr.rel (!%p12_p0) target bundleno = 4 (0x4), region = 134 }

// kernel: ordrec_forward.3
= control target key start
LH: loop header
LB: loop body
LE: loop exit
PB: predicated region body
PF: predicated region fallthrough
CT: control target
= control target key end

     0   :  { %s1671_s0 = inlined_call_operand.vmem [shape: bf16[256,256], index: 0, kind: input, shape index: {}]   ;;  %s1672_s1 = inlined_call_operand.vmem [shape: bf16[256,128], index: 1, kind: input, shape index: {}]   ;;  %s1673_s2 = inlined_call_operand.vmem [shape: f32[256,128], index: 2, kind: input, shape index: {}]   ;;  %s1674_s3 = inlined_call_operand.hbm [shape: bf16[256,128], index: 3, kind: output, shape index: {0}]   ;;  %s1675_s4 = inlined_call_operand.vmem [shape: f32[256,128], index: 4, kind: output, shape index: {1}]  }
   0x1   :  { %1681 = sst [smem:[#allocation12_spill]] %s1671_s0 }
   0x2   :  { %10 = vsyncpa [#allocation5], 0 }
   0x3   :  { %12 = vsyncpa [#allocation5 + $0x1], 0  ;;  %s1401_s15 = smov 0   ;;  %s1403_s16 = smov 0  }
   0x4   :  { %s1405_s17 = smov 0   ;;  %s1407_s18 = smov 0  }
   0x5   :  { %s1409_s19 = smov 0   ;;  %s1411_s20 = smov 0  }
   0x6   :  { %s1413_s21 = smov 0   ;;  %s1415_s22 = smov 0  }
   0x7   :  { %s1417_s23 = smov 0   ;;  %s1419_s24 = smov 0  }
   0x8 LB: > { %1682 = sst [smem:[#allocation7_spill]] %s1362_s22  ;;  %s971_s25 = sadd.s32 4294967295, %s1370_s24   ;;  %s1370_s24 = sphi %s1419_s24, %s18_s24   ;;  %s1366_s23 = sphi %s1417_s23, %s1696_s23   ;;  %s1362_s22 = sphi %s1415_s22, %s1695_s22   ;;  %s1358_s21 = sphi %s1413_s21, %s1694_s21   ;;  %s1354_s20 = sphi %s1411_s20, %s1693_s20   ;;  %s1350_s19 = sphi %s1409_s19, %s1701_s19   ;;  %s1346_s18 = sphi %s1407_s18, %s1700_s18   ;;  %s1342_s17 = sphi %s1405_s17, %s1699_s17   ;;  %s1338_s16 = sphi %s1403_s16, %s1698_s16   ;;  %s1334_s15 = sphi %s1401_s15, %s1697_s15  }
   0x9   : > { %1683 = sst [smem:[#allocation8_spill]] %s1366_s23  ;;  %s972_s26 = sadd.s32 4294967294, %s1370_s24  }
   0xa   : > { %s27_s27 = sadd.s32 1, %s1362_s22  ;;  %s30_s28 = sadd.s32 1, %s1366_s23 }
   0xb   : > { %p28_p0 = scmp.ge.s32.totalorder %s27_s27, 2  ;;  %s39_s29 = sadd.s32 1, %s1350_s19 }
   0xc   : > { %p46_p1 = scmp.ne.s32.totalorder %s1350_s19, %s1346_s18  ;;  %p47_p2 = scmp.eq.s32.totalorder %s1370_s24, 0 }
   0xd   : > { %s1703_s27 = smov (%p28_p0, %s27_s27), 0  ;;  %s1705_s28 = smov (!%p28_p0, %s30_s28), %s1366_s23 }
   0xe   : > { %1684 = sst [smem:[#allocation9_spill]] %s1703_s27  ;;  %s35_s30 = ssub.s32 %s1362_s22, %s1703_s27 }
   0xf   : > { %p1464_p3 = por %p47_p2, %p46_p1  ;;  %p32_p4 = scmp.ge.s32.totalorder %s1705_s28, 2 }
  0x10   : > { %s117_s6 = sadd.s32 1, %s1342_s17  ;;  %p127_p5 = scmp.ne.s32.totalorder %s1342_s17, %s1338_s16 }
  0x11   : > { %p128_p6 = scmp.eq.s32.totalorder %s971_s25, 3  ;;  %s1707_s28 = smov (%p32_p4, %s1705_s28), 0 }
  0x12   : > { %1686 = sst [smem:[#allocation10_spill]] %s1707_s28  ;;  %p133_p8 = scmp.ne.s32.totalorder %s1338_s16, %s1334_s15 }
  0x13   : > { %p1473_p7 = por %p128_p6, %p127_p5  ;;  %s34_s8 = ssub.s32 %s1366_s23, %s1707_s28 }
  0x14   : > { %p134_p9 = scmp.eq.s32.totalorder %s972_s26, 3  ;;  %s36_s9 = sor.u32 %s35_s30, %s34_s8 }
  0x15   : > { %p115_p10 = scmp.eq.s32.totalorder %s34_s8, 0  ;;  %p37_p11 = scmp.eq.s32.totalorder %s36_s9, 0 }
  0x16   : > { %p1481_p12 = por %p134_p9, %p133_p8  ;;  %p974_p13 = scmp.ge.s32.totalorder %s1370_s24, 4 }
  0x17   : > { %s1486_s11 = scalar_select %p115_p10, %s1342_s17, %s117_s6  }
  0x18   : > { %s1489_s12 = scalar_select %p37_p11, %s1350_s19, %s39_s29  }
  0x19   : > { %176 = sbr.rel (%p974_p13) target bundleno = 50 (0x32), region = 16 }
  0x1a   : > { %1689 = sst [smem:[#allocation11_spill]] %s1489_s12 }
  0x1e   : > { %179 = sbr.rel (!%p1464_p3) target bundleno = 50 (0x32), region = 20  ;;  %s181_s13 = sand.u32 (%p1464_p3), 1, %s1350_s19  }
  0x1f   : > { %s1027_s14 = sshll.u32 (%p1464_p3), %s1366_s23, 5  ;;  %s975_s25 = sshll.u32 (%p1464_p3), %s181_s13, 6 }
  0x20   : > { %s186_s26 = sadd.s32 (%p1464_p3), %s1362_s22, %s1027_s14  ;;  %s1690_s0 = sld [smem:[#allocation12_spill]] (%p1464_p3) }
  0x21   : > { %s978_s30 = sshll.u32 (%p1464_p3), %s186_s26, 2  ;;  %s183_s29 = scalar_lea.vmem (%p1464_p3), [#allocation3], %s975_s25 }
  0x26   : > { %s1500_s6 = scalar_lea.vmem %s1690_s0, %s978_s30 }
  0x27   : > { %v205_v0 = vld [vmem:[%s1500_s6] sm:$0xf]  ;;  %v207_v1 = vld [vmem:[%s1500_s6 + $0x8] sm:$0xf]  ;;  %v209_v2 = vld [vmem:[%s1500_s6 + $0x10] sm:$0xf] }
  0x28   : > { %206 = vst [vmem:[%s183_s29] sm:$0xf] %v205_v0  ;;  %208 = vst [vmem:[%s183_s29 + $0x4] sm:$0xf] %v207_v1  ;;  %v211_v3 = vld [vmem:[%s1500_s6 + $0x18] sm:$0xf] }
  0x29   : > { %210 = vst [vmem:[%s183_s29 + $0x8] sm:$0xf] %v209_v2  ;;  %v213_v4 = vld [vmem:[%s1500_s6 + $0x20] sm:$0xf]  ;;  %v215_v5 = vld [vmem:[%s1500_s6 + $0x28] sm:$0xf] }
  0x2a   : > { %212 = vst [vmem:[%s183_s29 + $0xc] sm:$0xf] %v211_v3  ;;  %214 = vst [vmem:[%s183_s29 + $0x10] sm:$0xf] %v213_v4  ;;  %v217_v6 = vld [vmem:[%s1500_s6 + $0x30] sm:$0xf] }
  0x2b   : > { %216 = vst [vmem:[%s183_s29 + $0x14] sm:$0xf] %v215_v5  ;;  %v219_v7 = vld [vmem:[%s1500_s6 + $0x38] sm:$0xf]  ;;  %v221_v8 = vld [vmem:[%s1500_s6 + $0x40] sm:$0xf] }
  0x2c   : > { %218 = vst [vmem:[%s183_s29 + $0x18] sm:$0xf] %v217_v6  ;;  %220 = vst [vmem:[%s183_s29 + $0x1c] sm:$0xf] %v219_v7  ;;  %v223_v9 = vld [vmem:[%s1500_s6 + $0x48] sm:$0xf] }
  0x2d   : > { %222 = vst [vmem:[%s183_s29 + $0x20] sm:$0xf] %v221_v8  ;;  %v225_v10 = vld [vmem:[%s1500_s6 + $0x50] sm:$0xf]  ;;  %v227_v11 = vld [vmem:[%s1500_s6 + $0x58] sm:$0xf] }
  0x2e   : > { %224 = vst [vmem:[%s183_s29 + $0x24] sm:$0xf] %v223_v9  ;;  %226 = vst [vmem:[%s183_s29 + $0x28] sm:$0xf] %v225_v10  ;;  %v229_v12 = vld [vmem:[%s1500_s6 + $0x60] sm:$0xf] }
  0x2f   : > { %228 = vst [vmem:[%s183_s29 + $0x2c] sm:$0xf] %v227_v11  ;;  %v231_v13 = vld [vmem:[%s1500_s6 + $0x68] sm:$0xf]  ;;  %v233_v14 = vld [vmem:[%s1500_s6 + $0x70] sm:$0xf] }
  0x30   : > { %230 = vst [vmem:[%s183_s29 + $0x30] sm:$0xf] %v229_v12  ;;  %232 = vst [vmem:[%s183_s29 + $0x34] sm:$0xf] %v231_v13  ;;  %v235_v15 = vld [vmem:[%s1500_s6 + $0x78] sm:$0xf] }
  0x31   : > { %234 = vst [vmem:[%s183_s29 + $0x38] sm:$0xf] %v233_v14  ;;  %236 = vst [vmem:[%s183_s29 + $0x3c] sm:$0xf] %v235_v15 }
  0x32 PF: > { %p979_p0 = scmp.ge.s32.totalorder %s1370_s24, 1  ;;  %p309_p1 = scmp.lt.s32.totalorder %s1370_s24, 5 }
  0x34   : > { %p310_p2 = pnand %p979_p0, %p309_p1 }
  0x35   : > { %s316_s5 = sand.u32 (!%p310_p2), 1, %s1346_s18   ;;  %s1678_s13 = sand.u32 (!%p310_p2), 1, %s1338_s16  }
  0x36   : > { %313 = sbr.rel (%p310_p2) target bundleno = 362 (0x16a), region = 69  ;;  %s980_s14 = sshll.u32 (!%p310_p2), %s316_s5, 6 }
  0x37   : > { %s981_s25 = sshll.u32 (!%p310_p2), %s1678_s13, 6  ;;  %s982_s26 = sshll.u32 (!%p310_p2), %s1354_s20, 4 }
  0x38   : > { %s984_s30 = sshll.u32 (!%p310_p2), %s1358_s21, 4  ;;  %p358_p3 = scmp.lt.s32.totalorder (!%p310_p2), %s982_s26, 31 }
  0x39   : > { %p364_p4 = scmp.lt.s32.totalorder (!%p310_p2), %s984_s30, 31  ;;  %s1541_s22 = scalar_lea.vmem (!%p310_p2), [#allocation3], %s980_s14 }
  0x3a   : > { %s1543_s12 = scalar_lea.vmem (!%p310_p2), [#allocation4], %s981_s25  ;;  %p988_p5 = scmp.ne.s32.totalorder (!%p310_p2), %s1354_s20, 0 }
  0x3b   : > { %s1709_s26 = smov (!%p358_p3, %s982_s26), 31  ;;  %s1711_s30 = smov (!%p364_p4, %s984_s30), 31 }
  0x3c   : > { %s983_s8 = sshll.u32 %s1709_s26, 2  ;;  %s985_s0 = sshll.u32 %s1711_s30, 3 }
  0x3d   : > { %s1529_s29 = scalar_lea.vmem %s1672_s1, %s983_s8  ;;  %s1534_s18 = scalar_lea.vmem %s1673_s2, %s985_s0 }
  0x3e   : > { %s1539_s23 = scalar_lea.vmem %s1675_s4, %s985_s0  ;;  %380 = sbr.rel (%p988_p5) target bundleno = 76 (0x4c), region = 77 }
  0x43   : > { %v1372_v16 = vmov 0.0  }
  0x44   : > { %381 = vst [vmem:[#allocation2 + $0x30] sm:$0xff] %v1372_v16  ;;  %382 = vst [vmem:[#allocation2] sm:$0xff] %v1372_v16 }
  0x45   : > { %383 = vst [vmem:[#allocation2 + $0x58] sm:$0xff] %v1372_v16  ;;  %384 = vst [vmem:[#allocation2 + $0x18] sm:$0xff] %v1372_v16 }
  0x46   : > { %385 = vst [vmem:[#allocation2 + $0x50] sm:$0xff] %v1372_v16  ;;  %386 = vst [vmem:[#allocation2 + $0x68] sm:$0xff] %v1372_v16 }
  0x47   : > { %387 = vst [vmem:[#allocation2 + $0x8] sm:$0xff] %v1372_v16  ;;  %388 = vst [vmem:[#allocation2 + $0x48] sm:$0xff] %v1372_v16 }
  0x48   : > { %389 = vst [vmem:[#allocation2 + $0x40] sm:$0xff] %v1372_v16  ;;  %390 = vst [vmem:[#allocation2 + $0x20] sm:$0xff] %v1372_v16 }
  0x49   : > { %391 = vst [vmem:[#allocation2 + $0x10] sm:$0xff] %v1372_v16  ;;  %392 = vst [vmem:[#allocation2 + $0x38] sm:$0xff] %v1372_v16 }
  0x4a   : > { %393 = vst [vmem:[#allocation2 + $0x60] sm:$0xff] %v1372_v16  ;;  %394 = vst [vmem:[#allocation2 + $0x70] sm:$0xff] %v1372_v16 }
  0x4b   : > { %395 = vst [vmem:[#allocation2 + $0x78] sm:$0xff] %v1372_v16  ;;  %396 = vst [vmem:[#allocation2 + $0x28] sm:$0xff] %v1372_v16 }
  0x4c PF: > { %v1246_v17 = vld [vmem:[%s1529_s29 + $0x38] sm:$0xff]   ;;  %v1247_v18 = vld [vmem:[%s1529_s29 + $0x30] sm:$0xff]   ;;  %v1248_v19 = vld [vmem:[%s1529_s29 + $0x28] sm:$0xff]   ;;  %p1005_p6 = scmp.ne.s32.totalorder %s1354_s20, 1 }
  0x4d   : > { %1108 = vmatprep.subr.bf16.mxu0 %v1246_v17  ;;  %1140 = vmatprep.subr.bf16.mxu1 %v1246_v17  ;;  %v1249_v20 = vld [vmem:[%s1529_s29 + $0x20] sm:$0xff]   ;;  %v1250_v23 = vld [vmem:[%s1529_s29 + $0x18] sm:$0xff]   ;;  %v1251_v24 = vld [vmem:[%s1529_s29 + $0x10] sm:$0xff]  }
  0x4e   : > { %1109 = vmatpush3.bf16.msra.mxu0 %v1246_v17  ;;  %1148 = vmatpush3.bf16.msra.mxu1 %v1246_v17  ;;  %v1254_v21 = vld [vmem:[%s1541_s22] sm:$0xff]   ;;  %v1252_v25 = vld [vmem:[%s1529_s29 + $0x8] sm:$0xff]   ;;  %v1258_v29 = vld [vmem:[%s1541_s22 + $0x10] sm:$0xff]  }
  0x4f   : > { %1110 = vmatprep.subr.bf16.mxu0 %v1247_v18  ;;  %1141 = vmatprep.subr.bf16.mxu1 %v1247_v18  ;;  %v1255_v22 = vld [vmem:[%s1541_s22 + $0x20] sm:$0xff]   ;;  %v1256_v27 = vld [vmem:[%s1541_s22 + $0x8] sm:$0xff]   ;;  %v1259_v30 = vld [vmem:[%s1541_s22 + $0x30] sm:$0xff]  }
  0x50   : > { %1124 = vmatprep.mubr.bf16.mxu0 %v1254_v21  ;;  %1132 = vmatprep.mubr.bf16.mxu1 %v1255_v22  ;;  %v1253_v26 = vld [vmem:[%s1529_s29] sm:$0xff]   ;;  %v1257_v28 = vld [vmem:[%s1541_s22 + $0x28] sm:$0xff]   ;;  %v1260_v31 = vld [vmem:[%s1541_s22 + $0x18] sm:$0xff]  }
  0x51   : > { %v1261_v32 = vld [vmem:[%s1541_s22 + $0x38] sm:$0xff]   ;;  %v407_v34 = vld [vmem:[#allocation2 + $0x10] sm:$0xff]  ;;  %v405_v38 = vld [vmem:[#allocation2 + $0x40] sm:$0xff] }
  0x52   : > { %1111 = vmatpush3.bf16.msra.mxu0 %v1247_v18  ;;  %1149 = vmatpush3.bf16.msra.mxu1 %v1247_v18  ;;  %v399_v33 = vld [vmem:[#allocation2 + $0x58] sm:$0xff]  ;;  %v397_v37 = vld [vmem:[#allocation2 + $0x30] sm:$0xff]  ;;  %v398_v49 = vld [vmem:[#allocation2] sm:$0xff] }
  0x53   : > { %1112 = vmatprep.subr.bf16.mxu0 %v1248_v19  ;;  %1142 = vmatprep.subr.bf16.mxu1 %v1248_v19  ;;  %v400_v43 = vld [vmem:[#allocation2 + $0x18] sm:$0xff]  ;;  %v406_v50 = vld [vmem:[#allocation2 + $0x20] sm:$0xff]  ;;  %v403_v55 = vld [vmem:[#allocation2 + $0x8] sm:$0xff] }
  0x54   : > { %v408_v44 = vld [vmem:[#allocation2 + $0x38] sm:$0xff]  ;;  %v401_v61 = vld [vmem:[#allocation2 + $0x50] sm:$0xff]  ;;  %v409_v62 = vld [vmem:[#allocation2 + $0x60] sm:$0xff] }
  0x55   : > { %v411_v56 = vld [vmem:[#allocation2 + $0x78] sm:$0xff]  ;;  %v404_v3 = vld [vmem:[#allocation2 + $0x48] sm:$0xff]  ;;  %v410_v10 = vld [vmem:[#allocation2 + $0x70] sm:$0xff] }
  0x56   : > { %1113 = vmatpush3.bf16.msra.mxu0 %v1248_v19  ;;  %1150 = vmatpush3.bf16.msra.mxu1 %v1248_v19  ;;  %v412_v4 = vld [vmem:[#allocation2 + $0x28] sm:$0xff] }
  0x57   : > { %1114 = vmatprep.subr.bf16.mxu0 %v1249_v20  ;;  %1143 = vmatprep.subr.bf16.mxu1 %v1249_v20  ;;  %v402_v9 = vld [vmem:[#allocation2 + $0x68] sm:$0xff] }
  0x5a   : > { %1115 = vmatpush3.bf16.msra.mxu0 %v1249_v20  ;;  %1151 = vmatpush3.bf16.msra.mxu1 %v1249_v20 }
  0x5b   : > { %1116 = vmatprep.subr.bf16.mxu0 %v1250_v23  ;;  %1144 = vmatprep.subr.bf16.mxu1 %v1250_v23 }
  0x5e   : > { %1117 = vmatpush3.bf16.msra.mxu0 %v1250_v23  ;;  %1152 = vmatpush3.bf16.msra.mxu1 %v1250_v23 }
  0x5f   : > { %1118 = vmatprep.subr.bf16.mxu0 %v1251_v24  ;;  %1145 = vmatprep.subr.bf16.mxu1 %v1251_v24 }
  0x62   : > { %1119 = vmatpush3.bf16.msra.mxu0 %v1251_v24  ;;  %1153 = vmatpush3.bf16.msra.mxu1 %v1251_v24 }
  0x63   : > { %1120 = vmatprep.subr.bf16.mxu0 %v1252_v25  ;;  %1146 = vmatprep.subr.bf16.mxu1 %v1252_v25 }
  0x66   : > { %1121 = vmatpush3.bf16.msra.mxu0 %v1252_v25  ;;  %1154 = vmatpush3.bf16.msra.mxu1 %v1252_v25 }
  0x67   : > { %1122 = vmatprep.subr.bf16.mxu0 %v1253_v26  ;;  %1147 = vmatprep.subr.bf16.mxu1 %v1253_v26 }
  0x6a   : > { %1123 = vmatpush3.bf16.msra.mxu0 %v1253_v26  ;;  %1155 = vmatpush3.bf16.msra.mxu1 %v1253_v26 }
  0x6d   : > { %1125 = vmatmul.mubr.bf16.vlgmr.msra.gmra.mxu0 %v1256_v27  ;;  %1133 = vmatmul.mubr.bf16.vlgmr.msra.gmra.mxu1 %v1257_v28 }
  0x6e   : > { %1128 = vmatprep.mubr.bf16.mxu0 %v1258_v29  ;;  %1136 = vmatprep.mubr.bf16.mxu1 %v1259_v30 }
  0x75   : > { %1129 = vmatmul.mubr.bf16.gmra.mxu0 %v1260_v31  ;;  %1137 = vmatmul.mubr.bf16.gmra.mxu1 %v1261_v32 }
 0x12d   : > { %v1126_v35 = vpop.f32.mrf.mxu0  ;;  %v1134_v36 = vpop.f32.mrf.mxu1 }
 0x12e   : > { %v640_v39 = vadd.f32 %v1126_v35, %v399_v33  ;;  %v648_v40 = vadd.f32 %v1134_v36, %v407_v34 }
 0x12f   : > { %v575_v41 = vpop.f32.mrf.mxu0  ;;  %v607_v42 = vpop.f32.mrf.mxu1 }
 0x130   : > { %656 = vst [vmem:[#allocation2 + $0x58] sm:$0xff] %v640_v39  ;;  %664 = vst [vmem:[#allocation2 + $0x10] sm:$0xff] %v648_v40  ;;  %v638_v45 = vadd.f32 %v575_v41, %v397_v37  ;;  %v646_v46 = vadd.f32 %v607_v42, %v405_v38 }
 0x131   : > { %v1127_v47 = vpop.f32.mrf.mxu0  ;;  %v1135_v48 = vpop.f32.mrf.mxu1 }
 0x132   : > { %654 = vst [vmem:[#allocation2 + $0x30] sm:$0xff] %v638_v45  ;;  %662 = vst [vmem:[#allocation2 + $0x40] sm:$0xff] %v646_v46  ;;  %v641_v51 = vadd.f32 %v1127_v47, %v400_v43  ;;  %v649_v52 = vadd.f32 %v1135_v48, %v408_v44 }
 0x133   : > { %v578_v53 = vpop.f32.mrf.mxu0  ;;  %v610_v54 = vpop.f32.mrf.mxu1 }
 0x134   : > { %657 = vst [vmem:[#allocation2 + $0x18] sm:$0xff] %v641_v51  ;;  %665 = vst [vmem:[#allocation2 + $0x38] sm:$0xff] %v649_v52  ;;  %v639_v57 = vadd.f32 %v578_v53, %v398_v49  ;;  %v647_v58 = vadd.f32 %v610_v54, %v406_v50 }
 0x135   : > { %v1130_v59 = vpop.f32.mrf.mxu0  ;;  %v1138_v60 = vpop.f32.mrf.mxu1 }
 0x136   : > { %655 = vst [vmem:[#allocation2] sm:$0xff] %v639_v57  ;;  %663 = vst [vmem:[#allocation2 + $0x20] sm:$0xff] %v647_v58  ;;  %v644_v63 = vadd.f32 %v1130_v59, %v403_v55  ;;  %v652_v0 = vadd.f32 %v1138_v60, %v411_v56 }
 0x137   : > { %v591_v1 = vpop.f32.mrf.mxu0  ;;  %v623_v2 = vpop.f32.mrf.mxu1 }
 0x138   : > { %660 = vst [vmem:[#allocation2 + $0x8] sm:$0xff] %v644_v63  ;;  %668 = vst [vmem:[#allocation2 + $0x78] sm:$0xff] %v652_v0  ;;  %v642_v5 = vadd.f32 %v591_v1, %v401_v61  ;;  %v650_v6 = vadd.f32 %v623_v2, %v409_v62 }
 0x139   : > { %v1131_v7 = vpop.f32.mrf.mxu0  ;;  %v1139_v8 = vpop.f32.mrf.mxu1 }
 0x13a   : > { %658 = vst [vmem:[#allocation2 + $0x50] sm:$0xff] %v642_v5  ;;  %666 = vst [vmem:[#allocation2 + $0x60] sm:$0xff] %v650_v6  ;;  %v645_v11 = vadd.f32 %v1131_v7, %v404_v3  ;;  %v653_v12 = vadd.f32 %v1139_v8, %v412_v4  ;;  %673 = sbr.rel (%p1005_p6) target bundleno = 337 (0x151), region = 81 }
 0x13b   : > { %v594_v13 = vpop.f32.mrf.mxu0  ;;  %v626_v14 = vpop.f32.mrf.mxu1 }
 0x13c   : > { %661 = vst [vmem:[#allocation2 + $0x48] sm:$0xff] %v645_v11  ;;  %669 = vst [vmem:[#allocation2 + $0x28] sm:$0xff] %v653_v12  ;;  %v643_v15 = vadd.f32 %v594_v13, %v402_v9  ;;  %v651_v16 = vadd.f32 %v626_v14, %v410_v10 }
 0x13e   : > { %659 = vst [vmem:[#allocation2 + $0x68] sm:$0xff] %v643_v15  ;;  %667 = vst [vmem:[#allocation2 + $0x70] sm:$0xff] %v651_v16 }
 0x13f   : > { %v674_v17 = vld [vmem:[#allocation2 + $0x30] sm:$0xff]  ;;  %v675_v18 = vld [vmem:[#allocation2] sm:$0xff]  ;;  %v676_v19 = vld [vmem:[#allocation2 + $0x58] sm:$0xff] }
 0x140   : > { %v1048_v20 = vpack.c.bf16 %v675_v18, %v674_v17  ;;  %v677_v21 = vld [vmem:[#allocation2 + $0x18] sm:$0xff]  ;;  %v680_v26 = vld [vmem:[#allocation2 + $0x8] sm:$0xff]  ;;  %v682_v28 = vld [vmem:[#allocation2 + $0x40] sm:$0xff] }
 0x141   : > { %v678_v22 = vld [vmem:[#allocation2 + $0x50] sm:$0xff]  ;;  %v1053_v24 = vpack.c.bf16 %v677_v21, %v676_v19  ;;  %v683_v30 = vld [vmem:[#allocation2 + $0x20] sm:$0xff]  ;;  %v685_v32 = vld [vmem:[#allocation2 + $0x38] sm:$0xff] }
 0x142   : > { %1049 = vst [vmem:[%s1543_s12] sm:$0xff] %v1048_v20   ;;  %v684_v31 = vld [vmem:[#allocation2 + $0x10] sm:$0xff]  ;;  %v1068_v33 = vpack.c.bf16 %v683_v30, %v682_v28  ;;  %v686_v35 = vld [vmem:[#allocation2 + $0x60] sm:$0xff]  ;;  %v688_v37 = vld [vmem:[#allocation2 + $0x78] sm:$0xff] }
 0x143   : > { %v681_v27 = vld [vmem:[#allocation2 + $0x48] sm:$0xff]  ;;  %1085 = vst [vmem:[%s1543_s12 + $0x8] sm:$0xff] %v1053_v24   ;;  %v1073_v34 = vpack.c.bf16 %v685_v32, %v684_v31  ;;  %v770_v40 = vld [vmem:[%s1534_s18] sm:$0xff]  ;;  %v772_v45 = vld [vmem:[%s1534_s18 + $0x10] sm:$0xff] }
 0x144   : > { %v1063_v29 = vpack.c.bf16 %v681_v27, %v680_v26  ;;  %v689_v39 = vld [vmem:[#allocation2 + $0x28] sm:$0xff]  ;;  %1088 = vst [vmem:[%s1543_s12 + $0x20] sm:$0xff] %v1068_v33   ;;  %v786_v43 = vadd.f32 %v770_v40, %v674_v17  ;;  %v773_v46 = vld [vmem:[%s1534_s18 + $0x18] sm:$0xff]  ;;  %v774_v47 = vld [vmem:[%s1534_s18 + $0x20] sm:$0xff]  ;;  %v788_v48 = vadd.f32 %v772_v45, %v676_v19 }
 0x145   : > { %v679_v23 = vld [vmem:[#allocation2 + $0x68] sm:$0xff]  ;;  %v687_v36 = vld [vmem:[#allocation2 + $0x70] sm:$0xff]  ;;  %1089 = vst [vmem:[%s1543_s12 + $0x28] sm:$0xff] %v1073_v34   ;;  %v1083_v42 = vpack.c.bf16 %v689_v39, %v688_v37  ;;  %v789_v49 = vadd.f32 %v773_v46, %v677_v21  ;;  %v790_v50 = vadd.f32 %v774_v47, %v678_v22  ;;  %v777_v53 = vld [vmem:[%s1534_s18 + $0x38] sm:$0xff] }
 0x146   : > { %v1058_v25 = vpack.c.bf16 %v679_v23, %v678_v22  ;;  %1087 = vst [vmem:[%s1543_s12 + $0x18] sm:$0xff] %v1063_v29   ;;  %v1078_v38 = vpack.c.bf16 %v687_v36, %v686_v35  ;;  %v771_v41 = vld [vmem:[%s1534_s18 + $0x8] sm:$0xff]  ;;  %v776_v52 = vld [vmem:[%s1534_s18 + $0x30] sm:$0xff]  ;;  %802 = vst [vmem:[%s1539_s23] sm:$0xff] %v786_v43  ;;  %v793_v56 = vadd.f32 %v777_v53, %v681_v27 }
 0x147   : > { %v787_v44 = vadd.f32 %v771_v41, %v675_v18  ;;  %v775_v51 = vld [vmem:[%s1534_s18 + $0x28] sm:$0xff]  ;;  %1091 = vst [vmem:[%s1543_s12 + $0x38] sm:$0xff] %v1083_v42   ;;  %v792_v55 = vadd.f32 %v776_v52, %v680_v26  ;;  %v778_v57 = vld [vmem:[%s1534_s18 + $0x40] sm:$0xff]  ;;  %v780_v59 = vld [vmem:[%s1534_s18 + $0x50] sm:$0xff] }
 0x148   : > { %1086 = vst [vmem:[%s1543_s12 + $0x10] sm:$0xff] %v1058_v25   ;;  %1090 = vst [vmem:[%s1543_s12 + $0x30] sm:$0xff] %v1078_v38   ;;  %v791_v54 = vadd.f32 %v775_v51, %v679_v23  ;;  %v779_v58 = vld [vmem:[%s1534_s18 + $0x48] sm:$0xff]  ;;  %v794_v60 = vadd.f32 %v778_v57, %v682_v28  ;;  %v796_v62 = vadd.f32 %v780_v59, %v684_v31  ;;  %v781_v63 = vld [vmem:[%s1534_s18 + $0x58] sm:$0xff] }
 0x149   : > { %803 = vst [vmem:[%s1539_s23 + $0x8] sm:$0xff] %v787_v44  ;;  %804 = vst [vmem:[%s1539_s23 + $0x10] sm:$0xff] %v788_v48  ;;  %v795_v61 = vadd.f32 %v779_v58, %v683_v30  ;;  %v782_v0 = vld [vmem:[%s1534_s18 + $0x60] sm:$0xff]  ;;  %v783_v1 = vld [vmem:[%s1534_s18 + $0x68] sm:$0xff]  ;;  %v797_v2 = vadd.f32 %v781_v63, %v685_v32 }
 0x14a   : > { %805 = vst [vmem:[%s1539_s23 + $0x18] sm:$0xff] %v789_v49  ;;  %806 = vst [vmem:[%s1539_s23 + $0x20] sm:$0xff] %v790_v50  ;;  %v798_v3 = vadd.f32 %v782_v0, %v686_v35  ;;  %v799_v4 = vadd.f32 %v783_v1, %v687_v36  ;;  %v784_v5 = vld [vmem:[%s1534_s18 + $0x70] sm:$0xff]  ;;  %v785_v6 = vld [vmem:[%s1534_s18 + $0x78] sm:$0xff] }
 0x14b   : > { %807 = vst [vmem:[%s1539_s23 + $0x28] sm:$0xff] %v791_v54  ;;  %808 = vst [vmem:[%s1539_s23 + $0x30] sm:$0xff] %v792_v55  ;;  %v800_v7 = vadd.f32 %v784_v5, %v688_v37  ;;  %v801_v8 = vadd.f32 %v785_v6, %v689_v39 }
 0x14c   : > { %809 = vst [vmem:[%s1539_s23 + $0x38] sm:$0xff] %v793_v56  ;;  %810 = vst [vmem:[%s1539_s23 + $0x40] sm:$0xff] %v794_v60 }
 0x14d   : > { %811 = vst [vmem:[%s1539_s23 + $0x48] sm:$0xff] %v795_v61  ;;  %812 = vst [vmem:[%s1539_s23 + $0x50] sm:$0xff] %v796_v62 }
 0x14e   : > { %813 = vst [vmem:[%s1539_s23 + $0x58] sm:$0xff] %v797_v2  ;;  %814 = vst [vmem:[%s1539_s23 + $0x60] sm:$0xff] %v798_v3 }
 0x14f   : > { %815 = vst [vmem:[%s1539_s23 + $0x68] sm:$0xff] %v799_v4  ;;  %816 = vst [vmem:[%s1539_s23 + $0x70] sm:$0xff] %v800_v7 }
 0x150   : > { %817 = vst [vmem:[%s1539_s23 + $0x78] sm:$0xff] %v801_v8 }
 0x151 PF: > { %s1044_s0 = sshll.u32 %s1358_s21, 10  ;;  %s837_s28 = sshll.u32 %s1543_s12, 4  ;;  %s1610_s28 = int_to_ptr.vmem [resolvable:$true] %s837_s28 }
 0x152   : > { %s1607_s27 = scalar_lea.hbm %s1674_s3, %s1044_s0  ;;  %s1691_s13 = sand.u32 1, %s1338_s16  }
 0x153   : > { %s1614_s14 = scalar_lea.sflag [#allocation5], %s1691_s13  ;;  %s1262_s23 = scalar_lea.vmem %s1610_s28, 1024 }
 0x154   : > { %p1263_p8 = scmp.ne.s32.totalorder %s1610_s28, %s1262_s23  ;;  %s1373_s21 = smov [#allocation4]  }
 0x155   : > { %s1266_s25 = sshll.u32 %s1373_s21, 4  ;;  %s1267_s25 = int_to_ptr.vmem [resolvable:$false] %s1266_s25 }
 0x156   : > { %p1264_p9 = pnand %p1263_p8, %p1473_p7  ;;  %s1268_s26 = scalar_lea.vmem %s1267_s25, 2048 }
 0x157   : > { %p1269_p11 = scmp.lt.s32.totalorder %s1610_s28, %s1267_s25  ;;  %p1270_p13 = scmp.lt.s32.totalorder %s1268_s26, %s1262_s23 }
 0x158   : > { %p1265_p10 = pneg %p1264_p9 }
 0x159   : > { %p1271_p0 = por %p1270_p13, %p1269_p11 }
 0x15b   : > { %p1272_p1 = pnand %p1271_p0, %p1265_p10 }
 0x15d   : > { %1275 = shalt.err (!%p1272_p1)
}
 0x15e   : > { %s1276_s12 = scalar_lea.hbm %s1607_s27, 1024  ;;  %s1280_s9 = scalar_lea.hbm %s1674_s3, 2048 }
 0x15f   : > { %p1277_p2 = scmp.ne.s32.totalorder %s1607_s27, %s1276_s12  ;;  %p1281_p5 = scmp.lt.s32.totalorder %s1607_s27, %s1674_s3 }
 0x160   : > { %p1282_p6 = scmp.lt.s32.totalorder %s1280_s9, %s1276_s12 }
 0x161   : > { %p1278_p3 = pnand %p1277_p2, %p1473_p7 }
 0x162   : > { %p1283_p8 = por %p1282_p6, %p1281_p5 }
 0x163   : > { %p1279_p4 = pneg %p1278_p3 }
 0x165   : > { %p1284_p9 = pnand %p1283_p8, %p1279_p4 }
 0x167   : > { %1287 = shalt.err (!%p1284_p9)
}
 0x168   : > { %s1374_s18 = smov 64   ;;  %s1375_s5 = smov 4  }
 0x169   : > { %1156 = dma.vmem_to_hbm [thread:$0]  (%p1473_p7), %s1610_s28, 1024, %s1607_s27, %s1614_s14, %s1374_s18, %s1374_s18, %s1375_s5  }
 0x16a PF: > { %p1162_p10 = scmp.ge.s32.totalorder %s1370_s24, 2  ;;  %s856_s0 = sand.u32 1, %s1334_s15  }
 0x16b   : > { %s857_s20 = scalar_lea.sflag [#allocation5], %s856_s0 }
 0x16c   : > { %p1159_p11 = pnand %p1162_p10, %p1481_p12 }
 0x16e   : > { %p1160_p13 = pneg %p1159_p11 }
 0x170   : > { %1329 = dma.done.wait (%p1160_p13), %s857_s20, 1024  }
 0x171   : > { %1331 = vsyncadd (%p1160_p13), %s857_s20, 4294966272  ;;  %s18_s24 = sadd.s32 1, %s1370_s24   ;;  %s1692_s7 = sld [smem:[#allocation11_spill]] }
 0x172   : > { %p15_p0 = scmp.ge.s32.totalorder %s18_s24, 6   ;;  %s1693_s20 = sld [smem:[#allocation7_spill]] }
 0x173   : > { %s1694_s21 = sld [smem:[#allocation8_spill]]  ;;  %s1697_s15 = smov %s1338_s16 }
 0x174   : > { %s1695_s22 = sld [smem:[#allocation9_spill]]  ;;  %s1698_s16 = smov %s1342_s17 }
 0x175   : > { %s1696_s23 = sld [smem:[#allocation10_spill]]  ;;  %s1699_s17 = smov %s1486_s11 }
 0x176   : > { %s1700_s18 = smov %s1350_s19  ;;  %17 = sbr.rel (!%p15_p0) target bundleno = 8 (0x8), region = 139 }
 0x177   : > { %s1701_s19 = smov %s1692_s7 }
 0x17b   :  { %870 = vsyncpa [#allocation5], 1 }
 0x17c   :  { %872 = vsyncpa [#allocation5 + $0x1], 1 }

</bundles_post_ra>
